<compile_context>
chip_gen: v5e
topology: v5e:2x2
jax: 0.10.0
libtpu: 0.0.40
codegen_flags: <defaults>
</compile_context>

<pallas_src>
import jax
import jax.numpy as jnp
from jax.experimental import pallas as pl
from jax.experimental.pallas import tpu as pltpu
from jax.scipy.linalg import block_diag

# ---------------- configuration (small shapes consistent with the module) ----
B = 2          # batch
IN_CH = 4      # in_channels
COND_CH = 5    # conditioning_channels
HID_CH = 8     # hidden_channels
LATENT = 2     # latent_dim
S = 3          # spatial_dim
RC = 2         # Rc
V = 32         # vox_reso
GROUPS = 6     # groups (divides ACT_IN=24 and ACT_HID=48)
NUM_RES = 3    # num_layers (residual blocks)

L = S * RC * V                   # sequence length of x / c
ACT_IN = IN_CH * S * RC          # 24
ACT_HID = HID_CH * S * RC        # 48
OUT_CH = 2 * LATENT * S * RC     # 24
COND_IN = COND_CH * S * RC       # 30
MU_COLS = LATENT * S * RC        # 12
N = B * V                        # rows seen by the kernel
EPS = 1e-5

LANES = 128                      # lane-dense channel padding
NBIAS = 2 + 2 * NUM_RES + 1      # proj_cond, first block, 2*NUM_RES res convs, final
BIAS_ROWS = 16                   # NBIAS padded up to a sublane multiple
ROW_TILE = 32                    # row tile for this tiny demo; use 128 (v5e) /
                                 # 256-512 (v6e/v7x) at production row counts
NUM_DOTS = NBIAS                 # one matmul per bias row


# ------------------------------- kernel --------------------------------------
def encoder_kernel(x_ref, c_ref, wp_ref, w0_ref, wres_ref, wf_ref, b_ref, out_ref):
    f32 = jnp.float32
    bf16 = jnp.bfloat16
    bias = b_ref[...]                                    # (BIAS_ROWS, 128) f32

    def bvec(k):                                         # (1, 128) static slice
        return bias[k:k + 1, :]

    # proj_cond: conv1x1 + BN(folded) + relu, then residual add with x (f32 elementwise)
    h = jnp.dot(c_ref[...], wp_ref[...], preferred_element_type=f32) + bvec(0)
    y = x_ref[...].astype(f32) + jnp.maximum(h, 0.0)

    # first GroupConv1x1Block: grouped conv (block-diag dense) + BN(folded) + relu
    y = jnp.maximum(
        jnp.dot(y.astype(bf16), w0_ref[...], preferred_element_type=f32) + bvec(1),
        0.0)

    # residual blocks: relu(y + relu(conv2(relu(conv1(y)))))
    for i in range(NUM_RES):
        t = jnp.maximum(
            jnp.dot(y.astype(bf16), wres_ref[2 * i], preferred_element_type=f32)
            + bvec(2 + 2 * i), 0.0)
        t = jnp.maximum(
            jnp.dot(t.astype(bf16), wres_ref[2 * i + 1], preferred_element_type=f32)
            + bvec(3 + 2 * i), 0.0)
        y = jnp.maximum(y + t, 0.0)

    # final conv (no BN / activation); columns pre-permuted: [mu | log_sigma | 0-pad]
    out_ref[...] = (
        jnp.dot(y.astype(bf16), wf_ref[...], preferred_element_type=f32)
        + bvec(NBIAS - 1))


# --------------------------- parameter construction --------------------------
def fold_bn(W, b, gamma, beta, rmean, rvar, eps=EPS):
    s = gamma / jnp.sqrt(rvar + eps)
    return W * s[:, None], s * b + beta - s * rmean


def conv_bn_params(key, cin, cout, groups):
    """Dense (block-diagonal if grouped) Conv1d(k=1) weight, eval-mode BN folded."""
    kw, kb, kg, kbeta = jax.random.split(key, 4)
    cig, cog = cin // groups, cout // groups
    blocks = 0.1 * jax.random.normal(kw, (groups, cog, cig), dtype=jnp.float32)
    W = block_diag(*[blocks[g] for g in range(groups)])          # (cout, cin)
    b = 0.1 * jax.random.normal(kb, (cout,), dtype=jnp.float32)
    gamma = 1.0 + 0.1 * jax.random.normal(kg, (cout,), dtype=jnp.float32)
    beta = 0.1 * jax.random.normal(kbeta, (cout,), dtype=jnp.float32)
    rmean = jnp.zeros((cout,), jnp.float32)
    rvar = jnp.ones((cout,), jnp.float32)
    return fold_bn(W, b, gamma, beta, rmean, rvar)


def _pad_weight(W):
    """Right-multiply weight (cin_k, cout_k) zero-padded to (128, 128), bf16."""
    out = jnp.zeros((LANES, LANES), jnp.float32)
    out = out.at[:W.shape[0], :W.shape[1]].set(W)
    return out.astype(jnp.bfloat16)


def make_params(key):
    keys = jax.random.split(key, 3 + 2 * NUM_RES)
    P = {}
    # proj_cond (groups=1, BN, relu)
    Wp, bp = conv_bn_params(keys[0], COND_CH, IN_CH, 1)
    # first grouped block
    W0, b0 = conv_bn_params(keys[1], ACT_IN, ACT_HID, GROUPS)
    # residual blocks: 2 grouped conv layers each
    Wres, bres = [], []
    for i in range(2 * NUM_RES):
        Wi, bi = conv_bn_params(keys[2 + i], ACT_HID, ACT_HID, GROUPS)
        Wres.append(Wi)
        bres.append(bi)
    # final conv: groups=1, no BN, no activation
    kf_w, kf_b = jax.random.split(keys[2 + 2 * NUM_RES], 2)
    Wf = 0.1 * jax.random.normal(kf_w, (OUT_CH, ACT_HID), dtype=jnp.float32)
    bf = 0.1 * jax.random.normal(kf_b, (OUT_CH,), dtype=jnp.float32)

    P.update(Wp=Wp, bp=bp, W0=W0, b0=b0, Wres=Wres, bres=bres, Wf=Wf, bf=bf)

    # ---- kernel layout: channels-last right-multiply, lane-padded to 128, bf16 ----
    # proj_cond acts identically on every (s, rc) block of the rearranged tensor
    P['wp_k'] = _pad_weight(jnp.kron(jnp.eye(S * RC, dtype=jnp.float32), Wp.T))
    P['w0_k'] = _pad_weight(W0.T)
    P['wres_k'] = jnp.stack([_pad_weight(W.T) for W in Wres])       # (6, 128, 128)

    # permute final-conv output channels so mu columns come first, log_sigma after
    perm = jnp.concatenate([jnp.arange(0, OUT_CH, 2), jnp.arange(1, OUT_CH, 2)])
    P['wf_k'] = _pad_weight(Wf.T[:, perm])

    # all biases consolidated into a single stacked, lane-padded f32 ref
    bias_rows = jnp.zeros((BIAS_ROWS, LANES), jnp.float32)
    bias_rows = bias_rows.at[0, :ACT_IN].set(jnp.tile(bp, S * RC))
    bias_rows = bias_rows.at[1, :ACT_HID].set(b0)
    for i in range(2 * NUM_RES):
        bias_rows = bias_rows.at[2 + i, :ACT_HID].set(bres[i])
    bias_rows = bias_rows.at[NBIAS - 1, :OUT_CH].set(bf[perm])
    P['bias_k'] = bias_rows
    return P


# ------------------------------ wrapper ---------------------------------------
def to_rows(a, ch, n_pad):
    """'b c (s rc v) -> (b v) (s rc c)', zero-padded to 128 lanes, cast to bf16."""
    a5 = a.reshape(B, ch, S, RC, V)
    a5 = jnp.transpose(a5, (0, 4, 2, 3, 1))              # (B, V, S, RC, ch)
    m = a5.reshape(B * V, S * RC * ch)
    out = jnp.zeros((n_pad, LANES), jnp.bfloat16)
    return out.at[:N, :m.shape[1]].set(m.astype(jnp.bfloat16))


def run_encoder_kernel(xm, cm, P):
    """xm, cm: (n_pad, 128) bf16 row slabs -> (n_pad, 128) f32 output slab."""
    n_pad = xm.shape[0]
    n_tiles = n_pad // ROW_TILE

    weight_bytes = (P['wp_k'].size + P['w0_k'].size + P['wres_k'].size
                    + P['wf_k'].size) * 2
    cost = pl.CostEstimate(
        flops=2 * n_pad * LANES * LANES * NUM_DOTS,
        transcendentals=0,
        bytes_accessed=(xm.size + cm.size) * 2 + weight_bytes
        + P['bias_k'].size * 4 + n_pad * LANES * 4,
    )

    return pl.pallas_call(
        encoder_kernel,
        out_shape=jax.ShapeDtypeStruct((n_pad, LANES), jnp.float32),
        grid_spec=pltpu.PrefetchScalarGridSpec(
            num_scalar_prefetch=0,
            grid=(n_tiles,),
            in_specs=[
                pl.BlockSpec((ROW_TILE, LANES), lambda i: (i, 0)),   # x rows
                pl.BlockSpec((ROW_TILE, LANES), lambda i: (i, 0)),   # c rows
                pl.BlockSpec((LANES, LANES), lambda i: (0, 0)),      # wp (resident)
                pl.BlockSpec((LANES, LANES), lambda i: (0, 0)),      # w0 (resident)
                pl.BlockSpec((2 * NUM_RES, LANES, LANES),
                             lambda i: (0, 0, 0)),                   # wres (resident)
                pl.BlockSpec((LANES, LANES), lambda i: (0, 0)),      # wf (resident)
                pl.BlockSpec((BIAS_ROWS, LANES), lambda i: (0, 0)),  # biases (resident)
            ],
            out_specs=pl.BlockSpec((ROW_TILE, LANES), lambda i: (i, 0)),
        ),
        compiler_params=pltpu.CompilerParams(
            dimension_semantics=("parallel",)),
        cost_estimate=cost,
    )(xm, cm, P['wp_k'], P['w0_k'], P['wres_k'], P['wf_k'], P['bias_k'])


def from_rows(m):
    """'(b v) (s rc f)' -> 'b f (s rc v)'."""
    m = m.reshape(B, V, S, RC, LATENT)
    m = jnp.transpose(m, (0, 4, 2, 3, 1))                # (B, F, S, RC, V)
    return m.reshape(B, LATENT, S * RC * V)


def group_conv_vae_encoder(x, c, P, return_raw=False):
    """x: (B, IN_CH, L), c: (B, COND_CH, L)  ->  (mu, log_sigma): (B, LATENT, L)."""
    n_pad = pl.cdiv(N, ROW_TILE) * ROW_TILE
    xm = to_rows(x, IN_CH, n_pad)
    cm = to_rows(c, COND_CH, n_pad)
    slab = run_encoder_kernel(xm, cm, P)
    out = slab[:N]
    mu = from_rows(out[:, :MU_COLS])                     # mu columns are contiguous
    log_sigma = from_rows(out[:, MU_COLS:2 * MU_COLS])   # log_sigma columns too
    if return_raw:
        return mu, log_sigma, slab
    return mu, log_sigma


# --------------- pure-JAX mirror of the kernel math (bf16 dots) ---------------
def kernel_math_ref(xm, cm, P):
    f32, bf16 = jnp.float32, jnp.bfloat16
    bias = P['bias_k']
    h = jnp.dot(cm, P['wp_k'], preferred_element_type=f32) + bias[0:1]
    y = xm.astype(f32) + jnp.maximum(h, 0.0)
    y = jnp.maximum(
        jnp.dot(y.astype(bf16), P['w0_k'], preferred_element_type=f32) + bias[1:2], 0.0)
    for i in range(NUM_RES):
        t = jnp.maximum(
            jnp.dot(y.astype(bf16), P['wres_k'][2 * i], preferred_element_type=f32)
            + bias[2 + 2 * i:3 + 2 * i], 0.0)
        t = jnp.maximum(
            jnp.dot(t.astype(bf16), P['wres_k'][2 * i + 1], preferred_element_type=f32)
            + bias[3 + 2 * i:4 + 2 * i], 0.0)
        y = jnp.maximum(y + t, 0.0)
    return (jnp.dot(y.astype(bf16), P['wf_k'], preferred_element_type=f32)
            + bias[NBIAS - 1:NBIAS])


# ------------------ pure-JAX f32 reference (NCW, like PyTorch) -----------------
def reference_forward(x, c, P):
    relu = lambda a: jnp.maximum(a, 0.0)
    h = relu(jnp.einsum('oc,bcl->bol', P['Wp'], c) + P['bp'][None, :, None])
    y = x + h
    # rearrange 'b c (s rc v) -> b (s rc c) v'
    y = y.reshape(B, IN_CH, S, RC, V).transpose(0, 2, 3, 1, 4).reshape(B, ACT_IN, V)
    y = relu(jnp.einsum('oc,bcv->bov', P['W0'], y) + P['b0'][None, :, None])
    for i in range(NUM_RES):
        t = relu(jnp.einsum('oc,bcv->bov', P['Wres'][2 * i], y)
                 + P['bres'][2 * i][None, :, None])
        t = relu(jnp.einsum('oc,bcv->bov', P['Wres'][2 * i + 1], t)
                 + P['bres'][2 * i + 1][None, :, None])
        y = relu(y + t)
    out = jnp.einsum('oc,bcv->bov', P['Wf'], y) + P['bf'][None, :, None]
    mu, ls = out[:, 0::2], out[:, 1::2]

    def rearr(m):  # 'b (s rc f) v -> b f (s rc v)'
        return m.reshape(B, S, RC, LATENT, V).transpose(0, 3, 1, 2, 4).reshape(
            B, LATENT, S * RC * V)

    return rearr(mu), rearr(ls)


# ------------------------------- main -----------------------------------------
if __name__ == "__main__":
    key = jax.random.PRNGKey(0)
    kx, kc, kp = jax.random.split(key, 3)
    x = jax.random.normal(kx, (B, IN_CH, L), dtype=jnp.float32)
    c = jax.random.normal(kc, (B, COND_CH, L), dtype=jnp.float32)
    P = make_params(kp)

    mu, log_sigma, slab = group_conv_vae_encoder(x, c, P, return_raw=True)
    mu = jax.block_until_ready(mu)
    log_sigma = jax.block_until_ready(log_sigma)
    slab = jax.block_until_ready(slab)

    # tight check: kernel vs. a pure-JAX mirror of the exact same bf16/f32 math
    n_pad = pl.cdiv(N, ROW_TILE) * ROW_TILE
    xm = to_rows(x, IN_CH, n_pad)
    cm = to_rows(c, COND_CH, n_pad)
    slab_ref = kernel_math_ref(xm, cm, P)
    assert jnp.allclose(slab, slab_ref, rtol=1e-4, atol=1e-4)

    # loose check: end-to-end vs. the f32 PyTorch-equivalent reference
    # (bf16 matmul operands with f32 accumulation -> small, bounded drift)
    mu_ref, ls_ref = reference_forward(x, c, P)
    assert mu.shape == (B, LATENT, L) and log_sigma.shape == (B, LATENT, L)
    assert jnp.allclose(mu, mu_ref, rtol=5e-2, atol=5e-2)
    assert jnp.allclose(log_sigma, ls_ref, rtol=5e-2, atol=5e-2)

    print("KERNEL_OK")
</pallas_src>

<mosaic_0001>
module attributes {stable_mosaic.version = 11 : i64} {
  func.func @encoder_kernel(%arg0: i32, %arg1: memref<32x128xbf16, #tpu.memory_space<vmem>>, %arg2: memref<32x128xbf16, #tpu.memory_space<vmem>>, %arg3: memref<128x128xbf16, #tpu.memory_space<vmem>>, %arg4: memref<128x128xbf16, #tpu.memory_space<vmem>>, %arg5: memref<6x128x128xbf16, #tpu.memory_space<vmem>>, %arg6: memref<128x128xbf16, #tpu.memory_space<vmem>>, %arg7: memref<16x128xf32, #tpu.memory_space<vmem>>, %arg8: memref<32x128xf32, #tpu.memory_space<vmem>>) attributes {dimension_semantics = [#tpu.dimension_semantics<parallel>], iteration_bounds = array<i64: 2>, scalar_prefetch = 0 : i64, scratch_operands = 0 : i64, tpu.core_type = #tpu.core_type<tc>, window_params = [{transform_indices = @transform_0, window_bounds = array<i64: 32, 128>}, {transform_indices = @transform_1, window_bounds = array<i64: 32, 128>}, {pipeline_mode = #tpu.pipeline_mode<synchronous>, transform_indices = @transform_2, window_bounds = array<i64: 128, 128>}, {pipeline_mode = #tpu.pipeline_mode<synchronous>, transform_indices = @transform_3, window_bounds = array<i64: 128, 128>}, {pipeline_mode = #tpu.pipeline_mode<synchronous>, transform_indices = @transform_4, window_bounds = array<i64: 6, 128, 128>}, {pipeline_mode = #tpu.pipeline_mode<synchronous>, transform_indices = @transform_5, window_bounds = array<i64: 128, 128>}, {pipeline_mode = #tpu.pipeline_mode<synchronous>, transform_indices = @transform_6, window_bounds = array<i64: 16, 128>}, {transform_indices = @transform_7, window_bounds = array<i64: 32, 128>}]} {
    %c0 = arith.constant 0 : index
    %c0_0 = arith.constant 0 : index
    %0 = vector.load %arg7[%c0, %c0_0] : memref<16x128xf32, #tpu.memory_space<vmem>>, vector<16x128xf32>
    %c0_1 = arith.constant 0 : index
    %c0_2 = arith.constant 0 : index
    %1 = vector.load %arg2[%c0_1, %c0_2] : memref<32x128xbf16, #tpu.memory_space<vmem>>, vector<32x128xbf16>
    %c0_3 = arith.constant 0 : index
    %c0_4 = arith.constant 0 : index
    %2 = vector.load %arg3[%c0_3, %c0_4] : memref<128x128xbf16, #tpu.memory_space<vmem>>, vector<128x128xbf16>
    %cst = arith.constant dense<0.000000e+00> : vector<32x128xf32>
    %3 = tpu.matmul %1, %2, %cst {dimension_numbers = #tpu.dot_dimension_numbers<[1], [0], [0], [1], [0, 0, 1, 1], [], []>} : vector<32x128xbf16>, vector<128x128xbf16>, vector<32x128xf32> -> vector<32x128xf32>
    %4 = vector.extract_strided_slice %0 {offsets = [0, 0], sizes = [1, 128], strides = [1, 1]} : vector<16x128xf32> to vector<1x128xf32>
    %5 = vector.broadcast %4 : vector<1x128xf32> to vector<32x128xf32>
    %6 = arith.addf %3, %5 : vector<32x128xf32>
    %c0_5 = arith.constant 0 : index
    %c0_6 = arith.constant 0 : index
    %7 = vector.load %arg1[%c0_5, %c0_6] : memref<32x128xbf16, #tpu.memory_space<vmem>>, vector<32x128xbf16>
    %8 = arith.extf %7 : vector<32x128xbf16> to vector<32x128xf32>
    %cst_7 = arith.constant 0.000000e+00 : f32
    %9 = vector.broadcast %cst_7 : f32 to vector<32x128xf32>
    %10 = arith.maximumf %6, %9 : vector<32x128xf32>
    %11 = arith.addf %8, %10 : vector<32x128xf32>
    %12 = arith.truncf %11 : vector<32x128xf32> to vector<32x128xbf16>
    %c0_8 = arith.constant 0 : index
    %c0_9 = arith.constant 0 : index
    %13 = vector.load %arg4[%c0_8, %c0_9] : memref<128x128xbf16, #tpu.memory_space<vmem>>, vector<128x128xbf16>
    %cst_10 = arith.constant dense<0.000000e+00> : vector<32x128xf32>
    %14 = tpu.matmul %12, %13, %cst_10 {dimension_numbers = #tpu.dot_dimension_numbers<[1], [0], [0], [1], [0, 0, 1, 1], [], []>} : vector<32x128xbf16>, vector<128x128xbf16>, vector<32x128xf32> -> vector<32x128xf32>
    %15 = vector.extract_strided_slice %0 {offsets = [1, 0], sizes = [1, 128], strides = [1, 1]} : vector<16x128xf32> to vector<1x128xf32>
    %16 = vector.broadcast %15 : vector<1x128xf32> to vector<32x128xf32>
    %17 = arith.addf %14, %16 : vector<32x128xf32>
    %cst_11 = arith.constant 0.000000e+00 : f32
    %18 = vector.broadcast %cst_11 : f32 to vector<32x128xf32>
    %19 = arith.maximumf %17, %18 : vector<32x128xf32>
    %20 = arith.truncf %19 : vector<32x128xf32> to vector<32x128xbf16>
    %c0_12 = arith.constant 0 : index
    %c0_13 = arith.constant 0 : index
    %c0_14 = arith.constant 0 : index
    %21 = vector.load %arg5[%c0_12, %c0_13, %c0_14] : memref<6x128x128xbf16, #tpu.memory_space<vmem>>, vector<1x128x128xbf16>
    %22 = vector.shape_cast %21 : vector<1x128x128xbf16> to vector<128x128xbf16>
    %cst_15 = arith.constant dense<0.000000e+00> : vector<32x128xf32>
    %23 = tpu.matmul %20, %22, %cst_15 {dimension_numbers = #tpu.dot_dimension_numbers<[1], [0], [0], [1], [0, 0, 1, 1], [], []>} : vector<32x128xbf16>, vector<128x128xbf16>, vector<32x128xf32> -> vector<32x128xf32>
    %24 = vector.extract_strided_slice %0 {offsets = [2, 0], sizes = [1, 128], strides = [1, 1]} : vector<16x128xf32> to vector<1x128xf32>
    %25 = vector.broadcast %24 : vector<1x128xf32> to vector<32x128xf32>
    %26 = arith.addf %23, %25 : vector<32x128xf32>
    %cst_16 = arith.constant 0.000000e+00 : f32
    %27 = vector.broadcast %cst_16 : f32 to vector<32x128xf32>
    %28 = arith.maximumf %26, %27 : vector<32x128xf32>
    %29 = arith.truncf %28 : vector<32x128xf32> to vector<32x128xbf16>
    %c1 = arith.constant 1 : index
    %c0_17 = arith.constant 0 : index
    %c0_18 = arith.constant 0 : index
    %30 = vector.load %arg5[%c1, %c0_17, %c0_18] : memref<6x128x128xbf16, #tpu.memory_space<vmem>>, vector<1x128x128xbf16>
    %31 = vector.shape_cast %30 : vector<1x128x128xbf16> to vector<128x128xbf16>
    %cst_19 = arith.constant dense<0.000000e+00> : vector<32x128xf32>
    %32 = tpu.matmul %29, %31, %cst_19 {dimension_numbers = #tpu.dot_dimension_numbers<[1], [0], [0], [1], [0, 0, 1, 1], [], []>} : vector<32x128xbf16>, vector<128x128xbf16>, vector<32x128xf32> -> vector<32x128xf32>
    %33 = vector.extract_strided_slice %0 {offsets = [3, 0], sizes = [1, 128], strides = [1, 1]} : vector<16x128xf32> to vector<1x128xf32>
    %34 = vector.broadcast %33 : vector<1x128xf32> to vector<32x128xf32>
    %35 = arith.addf %32, %34 : vector<32x128xf32>
    %cst_20 = arith.constant 0.000000e+00 : f32
    %36 = vector.broadcast %cst_20 : f32 to vector<32x128xf32>
    %37 = arith.maximumf %35, %36 : vector<32x128xf32>
    %38 = arith.addf %19, %37 : vector<32x128xf32>
    %cst_21 = arith.constant 0.000000e+00 : f32
    %39 = vector.broadcast %cst_21 : f32 to vector<32x128xf32>
    %40 = arith.maximumf %38, %39 : vector<32x128xf32>
    %41 = arith.truncf %40 : vector<32x128xf32> to vector<32x128xbf16>
    %c2 = arith.constant 2 : index
    %c0_22 = arith.constant 0 : index
    %c0_23 = arith.constant 0 : index
    %42 = vector.load %arg5[%c2, %c0_22, %c0_23] : memref<6x128x128xbf16, #tpu.memory_space<vmem>>, vector<1x128x128xbf16>
    %43 = vector.shape_cast %42 : vector<1x128x128xbf16> to vector<128x128xbf16>
    %cst_24 = arith.constant dense<0.000000e+00> : vector<32x128xf32>
    %44 = tpu.matmul %41, %43, %cst_24 {dimension_numbers = #tpu.dot_dimension_numbers<[1], [0], [0], [1], [0, 0, 1, 1], [], []>} : vector<32x128xbf16>, vector<128x128xbf16>, vector<32x128xf32> -> vector<32x128xf32>
    %45 = vector.extract_strided_slice %0 {offsets = [4, 0], sizes = [1, 128], strides = [1, 1]} : vector<16x128xf32> to vector<1x128xf32>
    %46 = vector.broadcast %45 : vector<1x128xf32> to vector<32x128xf32>
    %47 = arith.addf %44, %46 : vector<32x128xf32>
    %cst_25 = arith.constant 0.000000e+00 : f32
    %48 = vector.broadcast %cst_25 : f32 to vector<32x128xf32>
    %49 = arith.maximumf %47, %48 : vector<32x128xf32>
    %50 = arith.truncf %49 : vector<32x128xf32> to vector<32x128xbf16>
    %c3 = arith.constant 3 : index
    %c0_26 = arith.constant 0 : index
    %c0_27 = arith.constant 0 : index
    %51 = vector.load %arg5[%c3, %c0_26, %c0_27] : memref<6x128x128xbf16, #tpu.memory_space<vmem>>, vector<1x128x128xbf16>
    %52 = vector.shape_cast %51 : vector<1x128x128xbf16> to vector<128x128xbf16>
    %cst_28 = arith.constant dense<0.000000e+00> : vector<32x128xf32>
    %53 = tpu.matmul %50, %52, %cst_28 {dimension_numbers = #tpu.dot_dimension_numbers<[1], [0], [0], [1], [0, 0, 1, 1], [], []>} : vector<32x128xbf16>, vector<128x128xbf16>, vector<32x128xf32> -> vector<32x128xf32>
    %54 = vector.extract_strided_slice %0 {offsets = [5, 0], sizes = [1, 128], strides = [1, 1]} : vector<16x128xf32> to vector<1x128xf32>
    %55 = vector.broadcast %54 : vector<1x128xf32> to vector<32x128xf32>
    %56 = arith.addf %53, %55 : vector<32x128xf32>
    %cst_29 = arith.constant 0.000000e+00 : f32
    %57 = vector.broadcast %cst_29 : f32 to vector<32x128xf32>
    %58 = arith.maximumf %56, %57 : vector<32x128xf32>
    %59 = arith.addf %40, %58 : vector<32x128xf32>
    %cst_30 = arith.constant 0.000000e+00 : f32
    %60 = vector.broadcast %cst_30 : f32 to vector<32x128xf32>
    %61 = arith.maximumf %59, %60 : vector<32x128xf32>
    %62 = arith.truncf %61 : vector<32x128xf32> to vector<32x128xbf16>
    %c4 = arith.constant 4 : index
    %c0_31 = arith.constant 0 : index
    %c0_32 = arith.constant 0 : index
    %63 = vector.load %arg5[%c4, %c0_31, %c0_32] : memref<6x128x128xbf16, #tpu.memory_space<vmem>>, vector<1x128x128xbf16>
    %64 = vector.shape_cast %63 : vector<1x128x128xbf16> to vector<128x128xbf16>
    %cst_33 = arith.constant dense<0.000000e+00> : vector<32x128xf32>
    %65 = tpu.matmul %62, %64, %cst_33 {dimension_numbers = #tpu.dot_dimension_numbers<[1], [0], [0], [1], [0, 0, 1, 1], [], []>} : vector<32x128xbf16>, vector<128x128xbf16>, vector<32x128xf32> -> vector<32x128xf32>
    %66 = vector.extract_strided_slice %0 {offsets = [6, 0], sizes = [1, 128], strides = [1, 1]} : vector<16x128xf32> to vector<1x128xf32>
    %67 = vector.broadcast %66 : vector<1x128xf32> to vector<32x128xf32>
    %68 = arith.addf %65, %67 : vector<32x128xf32>
    %cst_34 = arith.constant 0.000000e+00 : f32
    %69 = vector.broadcast %cst_34 : f32 to vector<32x128xf32>
    %70 = arith.maximumf %68, %69 : vector<32x128xf32>
    %71 = arith.truncf %70 : vector<32x128xf32> to vector<32x128xbf16>
    %c5 = arith.constant 5 : index
    %c0_35 = arith.constant 0 : index
    %c0_36 = arith.constant 0 : index
    %72 = vector.load %arg5[%c5, %c0_35, %c0_36] : memref<6x128x128xbf16, #tpu.memory_space<vmem>>, vector<1x128x128xbf16>
    %73 = vector.shape_cast %72 : vector<1x128x128xbf16> to vector<128x128xbf16>
    %cst_37 = arith.constant dense<0.000000e+00> : vector<32x128xf32>
    %74 = tpu.matmul %71, %73, %cst_37 {dimension_numbers = #tpu.dot_dimension_numbers<[1], [0], [0], [1], [0, 0, 1, 1], [], []>} : vector<32x128xbf16>, vector<128x128xbf16>, vector<32x128xf32> -> vector<32x128xf32>
    %75 = vector.extract_strided_slice %0 {offsets = [7, 0], sizes = [1, 128], strides = [1, 1]} : vector<16x128xf32> to vector<1x128xf32>
    %76 = vector.broadcast %75 : vector<1x128xf32> to vector<32x128xf32>
    %77 = arith.addf %74, %76 : vector<32x128xf32>
    %cst_38 = arith.constant 0.000000e+00 : f32
    %78 = vector.broadcast %cst_38 : f32 to vector<32x128xf32>
    %79 = arith.maximumf %77, %78 : vector<32x128xf32>
    %80 = arith.addf %61, %79 : vector<32x128xf32>
    %cst_39 = arith.constant 0.000000e+00 : f32
    %81 = vector.broadcast %cst_39 : f32 to vector<32x128xf32>
    %82 = arith.maximumf %80, %81 : vector<32x128xf32>
    %83 = arith.truncf %82 : vector<32x128xf32> to vector<32x128xbf16>
    %c0_40 = arith.constant 0 : index
    %c0_41 = arith.constant 0 : index
    %84 = vector.load %arg6[%c0_40, %c0_41] : memref<128x128xbf16, #tpu.memory_space<vmem>>, vector<128x128xbf16>
    %cst_42 = arith.constant dense<0.000000e+00> : vector<32x128xf32>
    %85 = tpu.matmul %83, %84, %cst_42 {dimension_numbers = #tpu.dot_dimension_numbers<[1], [0], [0], [1], [0, 0, 1, 1], [], []>} : vector<32x128xbf16>, vector<128x128xbf16>, vector<32x128xf32> -> vector<32x128xf32>
    %86 = vector.extract_strided_slice %0 {offsets = [8, 0], sizes = [1, 128], strides = [1, 1]} : vector<16x128xf32> to vector<1x128xf32>
    %87 = vector.broadcast %86 : vector<1x128xf32> to vector<32x128xf32>
    %88 = arith.addf %85, %87 : vector<32x128xf32>
    %c0_43 = arith.constant 0 : index
    %c0_44 = arith.constant 0 : index
    %89 = vector.load %arg8[%c0_43, %c0_44] : memref<32x128xf32, #tpu.memory_space<vmem>>, vector<32x128xf32>
    tpu.vector_store %arg8[%c0_43, %c0_44], %88 {strides = array<i32>} : memref<32x128xf32, #tpu.memory_space<vmem>>, vector<32x128xf32>,
    return
  }
  func.func @transform_0(%arg0: i32) -> (i32, i32) {
    %c0_i32 = arith.constant 0 : i32
    %c0_i32_0 = arith.constant 0 : i32
    return %arg0, %c0_i32 : i32, i32
  }
  func.func @transform_1(%arg0: i32) -> (i32, i32) {
    %c0_i32 = arith.constant 0 : i32
    %c0_i32_0 = arith.constant 0 : i32
    return %arg0, %c0_i32 : i32, i32
  }
  func.func @transform_2(%arg0: i32) -> (i32, i32) {
    %c0_i32 = arith.constant 0 : i32
    %c0_i32_0 = arith.constant 0 : i32
    %c0_i32_1 = arith.constant 0 : i32
    return %c0_i32, %c0_i32_0 : i32, i32
  }
  func.func @transform_3(%arg0: i32) -> (i32, i32) {
    %c0_i32 = arith.constant 0 : i32
    %c0_i32_0 = arith.constant 0 : i32
    %c0_i32_1 = arith.constant 0 : i32
    return %c0_i32, %c0_i32_0 : i32, i32
  }
  func.func @transform_4(%arg0: i32) -> (i32, i32, i32) {
    %c0_i32 = arith.constant 0 : i32
    %c0_i32_0 = arith.constant 0 : i32
    %c0_i32_1 = arith.constant 0 : i32
    %c0_i32_2 = arith.constant 0 : i32
    return %c0_i32, %c0_i32_0, %c0_i32_1 : i32, i32, i32
  }
  func.func @transform_5(%arg0: i32) -> (i32, i32) {
    %c0_i32 = arith.constant 0 : i32
    %c0_i32_0 = arith.constant 0 : i32
    %c0_i32_1 = arith.constant 0 : i32
    return %c0_i32, %c0_i32_0 : i32, i32
  }
  func.func @transform_6(%arg0: i32) -> (i32, i32) {
    %c0_i32 = arith.constant 0 : i32
    %c0_i32_0 = arith.constant 0 : i32
    %c0_i32_1 = arith.constant 0 : i32
    return %c0_i32, %c0_i32_0 : i32, i32
  }
  func.func @transform_7(%arg0: i32) -> (i32, i32) {
    %c0_i32 = arith.constant 0 : i32
    %c0_i32_0 = arith.constant 0 : i32
    return %arg0, %c0_i32 : i32, i32
  }
}

</mosaic_0001>

<bundles_post_ra>
// kernel: tpu_custom_call.1
= control target key start
LH: loop header
LB: loop body
LE: loop exit
PB: predicated region body
PF: predicated region fallthrough
CT: control target
= control target key end

     0   :  { %s2646_s0 = inlined_call_operand.hbm [shape: bf16[64,128], index: 0, kind: input, shape index: {}]   ;;  %s2647_s1 = inlined_call_operand.hbm [shape: bf16[64,128], index: 1, kind: input, shape index: {}]   ;;  %s2648_s2 = inlined_call_operand.hbm [shape: bf16[128,128], index: 2, kind: input, shape index: {}]   ;;  %s2649_s3 = inlined_call_operand.hbm [shape: bf16[128,128], index: 3, kind: input, shape index: {}]   ;;  %s2650_s4 = inlined_call_operand.hbm [shape: bf16[6,128,128], index: 4, kind: input, shape index: {}]   ;;  %s2651_s5 = inlined_call_operand.hbm [shape: bf16[128,128], index: 5, kind: input, shape index: {}]   ;;  %s2652_s6 = inlined_call_operand.hbm [shape: f32[16,128], index: 6, kind: input, shape index: {}]   ;;  %s2653_s7 = inlined_call_operand.hbm [shape: f32[64,128], index: 7, kind: output, shape index: {}]  }
   0x1   :  { %2658 = sst [smem:[#allocation21_spill]] %s2646_s0 }
   0x2   :  { %2659 = sst [smem:[#allocation22_spill]] %s2648_s2 }
   0x3   :  { %2660 = sst [smem:[#allocation23_spill]] %s2649_s3 }
   0x4   :  { %2661 = sst [smem:[#allocation24_spill]] %s2650_s4 }
   0x5   :  { %2662 = sst [smem:[#allocation25_spill]] %s2651_s5 }
   0x6   :  { %12 = vsyncpa [#allocation3], 0 }
   0x7   :  { %14 = vsyncpa [#allocation3 + $0x1], 0 }
   0x8   :  { %15 = vsyncpa [#allocation6], 0 }
   0x9   :  { %17 = vsyncpa [#allocation6 + $0x1], 0 }
   0xa   :  { %18 = vsyncpa [#allocation9], 0 }
   0xb   :  { %19 = vsyncpa [#allocation12], 0 }
   0xc   :  { %20 = vsyncpa [#allocation4], 0 }
   0xd   :  { %22 = vsyncpa [#allocation4 + $0x1], 0  ;;  %s2323_s24 = smov 0   ;;  %s2325_s25 = smov 0  }
   0xe   :  { %s2327_s26 = smov 0   ;;  %s2329_s27 = smov 0  }
   0xf LB: > { %s2663_s2 = sld [smem:[#allocation22_spill]]  ;;  %s2347_s8 = sadd.s32 4294967295, %s2270_s27   ;;  %s2270_s27 = sphi %s2329_s27, %s2681_s27   ;;  %s2266_s26 = sphi %s2327_s26, %s2680_s26   ;;  %s2262_s25 = sphi %s2325_s25, %s2679_s25   ;;  %s2258_s24 = sphi %s2323_s24, %s2678_s24  }
  0x10   : > { %p1453_p0 = scmp.ge.s32.totalorder %s2270_s27, 1  ;;  %p49_p1 = scmp.eq.s32.totalorder %s2347_s8, 0 }
  0x11   : > { %p216_p2 = scmp.lt.s32.totalorder %s2270_s27, 3  ;;  %s2272_s10 = smov [#allocation7]  }
  0x12   : > { %s229_s11 = sshll.u32 %s2272_s10, 4  ;;  %s2665_s3 = sld [smem:[#allocation23_spill]]  ;;  %s230_s11 = int_to_ptr.vmem [resolvable:$true] %s229_s11 }
  0x13   : > { %p2352_p3 = pnand %p1453_p0, %p216_p2  ;;  %s2667_s5 = sld [smem:[#allocation25_spill]] }
  0x14   : > { %s2273_s19 = smov [#allocation8]   ;;  %s2654_s21 = smov 64  }
  0x15   : > { %s227_s30 = sshll.u32 %s2663_s2, 4  ;;  %p1896_p4 = pneg %p2352_p3  ;;  %s228_s30 = int_to_ptr.hbm [resolvable:$true] %s227_s30 }
  0x16   : > { %s243_s20 = sshll.u32 %s2273_s19, 4  ;;  %s2656_s22 = smov 4   ;;  %s244_s20 = int_to_ptr.vmem [resolvable:$true] %s243_s20 }
  0x17   : > { %p2364_p6 = pnand %p1896_p4, %p49_p1  ;;  %s2668_s4 = sld [smem:[#allocation24_spill]] }
  0x18   : > { %s241_s14 = sshll.u32 %s2665_s3, 4  ;;  %s2276_s10 = smov [#allocation11]   ;;  %s242_s14 = int_to_ptr.hbm [resolvable:$true] %s241_s14 }
  0x19   : > { %s269_s18 = sshll.u32 %s2667_s5, 4  ;;  %s271_s12 = sshll.u32 %s2276_s10, 4  ;;  %s270_s18 = int_to_ptr.hbm [resolvable:$true] %s269_s18  ;;  %s272_s12 = int_to_ptr.vmem [resolvable:$true] %s271_s12 }
  0x1a   : > { %1899 = dma.hbm_to_vmem [thread:$0]  (!%p2364_p6), %s228_s30, 1024, %s230_s11, [#allocation6], %s2654_s21, %s2654_s21, %s2656_s22  }
  0x1b   : > { %1902 = dma.hbm_to_vmem [thread:$0]  (!%p2364_p6), %s242_s14, 1024, %s244_s20, [#allocation9], %s2654_s21, %s2654_s21, %s2656_s22  }
  0x1c   : > { %1908 = dma.hbm_to_vmem [thread:$0]  (!%p2364_p6), %s270_s18, 1024, %s272_s12, [#allocation12], %s2654_s21, %s2654_s21, %s2656_s22  }
  0x1d   : > { %s255_s29 = sshll.u32 %s2668_s4, 4  ;;  %s2277_s30 = smov [#allocation10]   ;;  %s256_s29 = int_to_ptr.hbm [resolvable:$true] %s255_s29 }
  0x1e   : > { %s257_s11 = sshll.u32 %s2277_s30, 4  ;;  %s283_s16 = sshll.u32 %s2652_s6, 4  ;;  %s258_s11 = int_to_ptr.vmem [resolvable:$true] %s257_s11  ;;  %s284_s16 = int_to_ptr.hbm [resolvable:$true] %s283_s16 }
  0x1f   : > { %1905 = dma.hbm_to_vmem [thread:$0]  (!%p2364_p6), %s256_s29, 6144, %s258_s11, [#allocation9], %s2654_s21, %s2654_s21, %s2656_s22  }
  0x20   : > { %s2278_s17 = smov [#allocation13]   ;;  %s2279_s19 = smov 128  }
  0x21   : > { %s285_s18 = sshll.u32 %s2278_s17, 4  ;;  %s2280_s20 = smov 8   ;;  %s286_s18 = int_to_ptr.vmem [resolvable:$true] %s285_s18 }
  0x22   : > { %1911 = dma.hbm_to_vmem [thread:$0]  (!%p2364_p6), %s284_s16, 256, %s286_s18, [#allocation12], %s2279_s19, %s2279_s19, %s2280_s20  }
  0x23   : > { %s1452_s23 = sadd.s32 4294967294, %s2270_s27   ;;  %s2401_s28 = sadd.s32 1, %s2270_s27  }
  0x24   : > { %s35_s10 = sadd.s32 1, %s2266_s26  ;;  %s32_s12 = ssub.s32 %s2270_s27, %s2401_s28 }
  0x25   : > { %p42_p7 = scmp.ne.s32.totalorder %s2266_s26, %s2262_s25  ;;  %p33_p8 = scmp.eq.s32.totalorder %s32_s12, 0 }
  0x26   : > { %p43_p9 = scmp.eq.s32.totalorder %s2270_s27, 0  ;;  %p48_p10 = scmp.ne.s32.totalorder %s2262_s25, %s2258_s24 }
  0x27   : > { %p203_p11 = scmp.eq.s32.totalorder %s2347_s8, 1  ;;  %p209_p2 = scmp.eq.s32.totalorder %s1452_s23, 1 }
  0x28   : > { %s2413_s29 = scalar_select %p33_p8, %s2266_s26, %s35_s10  }
  0x29   : > { %p2415_p12 = por %p43_p9, %p42_p7  ;;  %p2421_p13 = por %p49_p1, %p48_p10 }
  0x2a   : > { %p2425_p0 = por %p203_p11, %p42_p7  ;;  %p1928_p4 = scmp.lt.s32.totalorder %s2270_s27, 2 }
  0x2b   : > { %s299_s13 = sand.u32 1, %s2266_s26   ;;  %p2431_p6 = por %p209_p2, %p48_p10 }
  0x2c   : > { %s1460_s16 = sshll.u32 %s299_s13, 4  ;;  %s1776_s17 = sshll.u32 %s2270_s27, 4 }
  0x2d   : > { %s2673_s0 = sld [smem:[#allocation21_spill]]  ;;  %s303_s12 = scalar_lea.vmem [#allocation2], %s1460_s16 }
  0x2e   : > { %s311_s21 = sshll.u32 %s303_s12, 4  ;;  %p2441_p7 = pnand %p1928_p4, %p2415_p12  ;;  %s312_s21 = int_to_ptr.vmem [resolvable:$true] %s311_s21 }
  0x2f   : > { %s330_s3 = scalar_lea.hbm %s2647_s1, %s1776_s17  ;;  %s325_s4 = scalar_lea.vmem [#allocation5], %s1460_s16 }
  0x30   : > { %s2448_s5 = sshll.u32 %s325_s4, 4  ;;  %s331_s18 = sshll.u32 %s330_s3, 4  ;;  %s332_s18 = int_to_ptr.hbm [resolvable:$true] %s331_s18  ;;  %s334_s5 = int_to_ptr.vmem [resolvable:$true] %s2448_s5 }
  0x31   : > { %s300_s19 = scalar_lea.sflag [#allocation3], %s299_s13  ;;  %p2132_p9 = pneg %p2441_p7 }
  0x33   : > { %s308_s20 = scalar_lea.hbm %s2673_s0, %s1776_s17  ;;  %s2135_s22 = scalar_lea.hbm %s2673_s0, 32 }
  0x34   : > { %s309_s10 = sshll.u32 %s308_s20, 4  ;;  %s310_s10 = int_to_ptr.hbm [resolvable:$true] %s309_s10 }
  0x35   : > { %s2128_s20 = sshra.s32 %s310_s10, 4  ;;  %s2129_s20 = int_to_ptr.hbm [resolvable:$true] %s2128_s20 }
  0x36   : > { %s2130_s12 = scalar_lea.hbm %s2129_s20, 16  ;;  %p2136_p12 = scmp.lt.s32.totalorder %s2129_s20, %s2673_s0 }
  0x37   : > { %p2131_p8 = scmp.ne.s32.totalorder %s2129_s20, %s2130_s12  ;;  %p2137_p2 = scmp.lt.s32.totalorder %s2135_s22, %s2130_s12 }
  0x39   : > { %p2133_p10 = pnand %p2132_p9, %p2131_p8  ;;  %p2138_p4 = por %p2137_p2, %p2136_p12 }
  0x3b   : > { %p2134_p11 = pneg %p2133_p10 }
  0x3d   : > { %p2139_p5 = pnand %p2138_p4, %p2134_p11 }
  0x3f   : > { %2142 = shalt.err (!%p2139_p5)
}
  0x40   : > { %s2675_s3 = smov 4   ;;  %s2676_s4 = smov 64  }
  0x41   : > { %1915 = dma.hbm_to_vmem [thread:$0]  (!%p2441_p7), %s310_s10, 256, %s312_s21, %s300_s19, %s2676_s4, %s2676_s4, %s2675_s3  }
  0x42   : > { %s321_s13 = sand.u32 1, %s2270_s27   ;;  %s2158_s2 = sshra.s32 %s332_s18, 4  ;;  %s2159_s2 = int_to_ptr.hbm [resolvable:$true] %s2158_s2 }
  0x43   : > { %s322_s30 = scalar_lea.sflag [#allocation6], %s321_s13  ;;  %s2160_s20 = scalar_lea.hbm %s2159_s2, 16 }
  0x44   : > { %p2161_p8 = scmp.ne.s32.totalorder %s2159_s2, %s2160_s20  ;;  %s2165_s17 = scalar_lea.hbm %s2647_s1, 32 }
  0x45   : > { %p2166_p11 = scmp.lt.s32.totalorder %s2159_s2, %s2647_s1  ;;  %p2167_p12 = scmp.lt.s32.totalorder %s2165_s17, %s2160_s20 }
  0x46   : > { %p2163_p5 = pnand %p2161_p8, %p2132_p9 }
  0x47   : > { %p2168_p2 = por %p2167_p12, %p2166_p11 }
  0x48   : > { %p2164_p10 = pneg %p2163_p5 }
  0x4a   : > { %p2169_p4 = pnand %p2168_p2, %p2164_p10 }
  0x4c   : > { %2172 = shalt.err (!%p2169_p4)
}
  0x4d   : > { %1918 = dma.hbm_to_vmem [thread:$0]  (!%p2441_p7), %s332_s18, 256, %s334_s5, %s322_s30, %s2676_s4, %s2676_s4, %s2675_s3  }
  0x4e   : > { %345 = sbr.rel (%p2352_p3) target bundleno = 1439 (0x59f), region = 48  ;;  %s2485_s21 = sand.u32 (!%p2352_p3), 1, %s2262_s25  }
  0x4f   : > { %s1467_s0 = sshll.u32 (!%p2352_p3), %s2485_s21, 4  ;;  %s348_s10 = scalar_lea.sflag (!%p2352_p3), [#allocation3], %s2485_s21 }
  0x50   : > { %s2489_s19 = scalar_lea.vmem (!%p2352_p3), [#allocation2], %s1467_s0 }
  0x53   : > { %2233 = dma.done.wait (%p2421_p13), %s348_s10, 256  }
  0x54   : > { %2235 = vsyncadd (%p2421_p13), %s348_s10, 4294967040  ;;  %s357_s5 = sand.u32 1, %s2347_s8   ;;  %s2496_s23 = scalar_lea.vmem [#allocation5], %s1467_s0 }
  0x55   : > { %s358_s9 = scalar_lea.sflag [#allocation6], %s357_s5 }
  0x56   : > { %2237 = dma.done.wait (%p2421_p13), %s358_s9, 256  }
  0x57   : > { %2239 = vsyncadd (%p2421_p13), %s358_s9, 4294967040 }
  0x58   : > { %2241 = dma.done.wait (%p49_p1), [#allocation6], 1024  }
  0x59   : > { %2243 = vsyncadd (%p49_p1), [#allocation6], 4294966272 }
  0x5a   : > { %2245 = dma.done.wait (%p49_p1), [#allocation9], 7168  }
  0x5b   : > { %2247 = vsyncadd (%p49_p1), [#allocation9], 4294960128 }
  0x5c   : > { %2249 = dma.done.wait (%p49_p1), [#allocation12], 1280  }
  0x5d   : > { %2251 = vsyncadd (%p49_p1), [#allocation12], 4294966016  ;;  %v1787_v0 = vld [vmem:[#allocation7 + $0x38] sm:$0xff]  ;;  %v1786_v1 = vld [vmem:[#allocation7 + $0x30] sm:$0xff]  ;;  %s1474_s15 = sshll.u32 %s2485_s21, 5  ;;  %s1852_s3 = sshll.u32 %s2347_s8, 5 }
  0x5e   : > { %509 = vmatpush.bf16.msra.mxu0 %v1787_v0  ;;  %v1785_v2 = vld [vmem:[#allocation7 + $0x28] sm:$0xff]  ;;  %v1784_v3 = vld [vmem:[#allocation7 + $0x20] sm:$0xff]  ;;  %v1783_v4 = vld [vmem:[#allocation7 + $0x18] sm:$0xff]  ;;  %s422_s18 = scalar_lea.vmem [#allocation14], %s1474_s15  ;;  %s1305_s30 = scalar_lea.hbm %s2653_s7, %s1852_s3 }
  0x5f   : > { %v1795_v5 = vld [vmem:[#allocation8 + $0x38] sm:$0xff]  ;;  %v1782_v6 = vld [vmem:[#allocation7 + $0x10] sm:$0xff]  ;;  %v1781_v8 = vld [vmem:[#allocation7 + $0x8] sm:$0xff]  ;;  %s1306_s2 = sshll.u32 %s422_s18, 4  ;;  %s1308_s20 = sshll.u32 %s1305_s30, 4  ;;  %s1307_s2 = int_to_ptr.vmem [resolvable:$true] %s1306_s2  ;;  %s1309_s20 = int_to_ptr.hbm [resolvable:$true] %s1308_s20 }
  0x60   : > { %611 = vmatpush.bf16.msra.mxu1 %v1795_v5  ;;  %v1794_v7 = vld [vmem:[#allocation8 + $0x30] sm:$0xff]  ;;  %v1793_v9 = vld [vmem:[#allocation8 + $0x28] sm:$0xff]  ;;  %v1780_v10 = vld [vmem:[#allocation7] sm:$0xff]  ;;  %s1294_s12 = scalar_lea.sflag [#allocation4], %s2485_s21  ;;  %s2202_s22 = sshra.s32 %s1309_s20, 4  ;;  %s2203_s22 = int_to_ptr.hbm [resolvable:$true] %s2202_s22 }
  0x61   : > { %v1792_v11 = vld [vmem:[#allocation8 + $0x20] sm:$0xff]  ;;  %v1779_v13 = vld [vmem:[%s2496_s23 + $0x8] sm:$0xff]  ;;  %v1790_v15 = vld [vmem:[#allocation8 + $0x10] sm:$0xff]  ;;  %s2204_s17 = scalar_lea.hbm %s2203_s22, 32  ;;  %s2208_s0 = scalar_lea.hbm %s2653_s7, 64 }
  0x62   : > { %510 = vmatpush.bf16.msra.mxu0 %v1786_v1  ;;  %v1778_v12 = vld [vmem:[%s2496_s23] sm:$0xff]  ;;  %v1791_v14 = vld [vmem:[#allocation8 + $0x18] sm:$0xff]  ;;  %v1789_v16 = vld [vmem:[#allocation8 + $0x8] sm:$0xff]  ;;  %p2205_p1 = scmp.ne.s32.totalorder %s2203_s22, %s2204_s17  ;;  %p2209_p7 = scmp.lt.s32.totalorder %s2203_s22, %s2653_s7 }
  0x63   : > { %v1788_v17 = vld [vmem:[#allocation8] sm:$0xff]  ;;  %v1803_v21 = vld [vmem:[#allocation10 + $0x38] sm:$0xff]  ;;  %v1802_v22 = vld [vmem:[#allocation10 + $0x30] sm:$0xff]  ;;  %p2210_p9 = scmp.lt.s32.totalorder %s2208_s0, %s2204_s17 }
  0x64   : > { %612 = vmatpush.bf16.msra.mxu1 %v1794_v7  ;;  %v2516_v18 = vld [vmem:[#allocation13] sm:$0xff]  ;;  %701 = vmatpush.bf16.msra.mxu2 %v1803_v21  ;;  %v1801_v25 = vld [vmem:[#allocation10 + $0x28] sm:$0xff]  ;;  %v1799_v48 = vld [vmem:[#allocation10 + $0x18] sm:$0xff]  ;;  %p2206_p3 = pnand %p2205_p1, %p2425_p0 }
  0x65   : > { %v448_v20 = vperm.slane %v2516_v18, 0  ;;  %v1854_v24 = vld [vmem:[%s2489_s19] sm:$0xff]   ;;  %v1861_v38 = vld [vmem:[%s2489_s19 + $0x8] sm:$0xff]   ;;  %v562_v55 = vperm.slane %v2516_v18, 1  ;;  %p2211_p8 = por %p2210_p9, %p2209_p7 }
  0x66   : > { %511 = vmatpush.bf16.msra.mxu0 %v1785_v2  ;;  %v1855_v27 = vunpack.c.l.bf16 %v1854_v24  ;;  %v1856_v30 = vunpack.c.h.bf16 %v1854_v24  ;;  %v1800_v32 = vld [vmem:[#allocation10 + $0x20] sm:$0xff]  ;;  %v1859_v40 = vunpack.c.l.bf16 %v1861_v38  ;;  %v1860_v43 = vunpack.c.h.bf16 %v1861_v38  ;;  %v1798_v49 = vld [vmem:[#allocation10 + $0x10] sm:$0xff]  ;;  %v1797_v50 = vld [vmem:[#allocation10 + $0x8] sm:$0xff]  ;;  %p2207_p13 = pneg %p2206_p3 }
  0x67   : > { %v1796_v51 = vld [vmem:[#allocation10] sm:$0xff]  ;;  %v1811_v52 = vld [vmem:[#allocation10 + $0x78] sm:$0xff]  ;;  %v1810_v54 = vld [vmem:[#allocation10 + $0x70] sm:$0xff] }
  0x68   : > { %613 = vmatpush.bf16.msra.mxu1 %v1793_v9  ;;  %702 = vmatpush.bf16.msra.mxu2 %v1802_v22  ;;  %v1809_v56 = vld [vmem:[#allocation10 + $0x68] sm:$0xff]  ;;  %v1808_v60 = vld [vmem:[#allocation10 + $0x60] sm:$0xff]  ;;  %v1807_v7 = vld [vmem:[#allocation10 + $0x58] sm:$0xff]  ;;  %p2212_p5 = pnand %p2211_p8, %p2207_p13 }
  0x69   : > { %792 = vmatpush.bf16.msra.mxu3 %v1811_v52  ;;  %v1805_v9 = vld [vmem:[#allocation10 + $0x48] sm:$0xff]  ;;  %v1827_v38 = vld [vmem:[#allocation10 + $0xf8] sm:$0xff] }
  0x6a   : > { %512 = vmatpush.bf16.msra.mxu0 %v1784_v3  ;;  %v1823_v52 = vld [vmem:[#allocation10 + $0xd8] sm:$0xff] }
  0x6c   : > { %614 = vmatpush.bf16.msra.mxu1 %v1792_v11  ;;  %703 = vmatpush.bf16.msra.mxu2 %v1801_v25  ;;  %v1819_v11 = vld [vmem:[#allocation10 + $0xb8] sm:$0xff] }
  0x6d   : > { %793 = vmatpush.bf16.msra.mxu3 %v1810_v54 }
  0x6e   : > { %513 = vmatpush.bf16.msra.mxu0 %v1783_v4 }
  0x70   : > { %615 = vmatpush.bf16.msra.mxu1 %v1791_v14  ;;  %704 = vmatpush.bf16.msra.mxu2 %v1800_v32  ;;  %v652_v14 = vperm.slane %v2516_v18, 2  ;;  %v1814_v32 = vld [vmem:[#allocation10 + $0x90] sm:$0xff] }
  0x71   : > { %794 = vmatpush.bf16.msra.mxu3 %v1809_v56 }
  0x72   : > { %514 = vmatpush.bf16.msra.mxu0 %v1782_v6 }
  0x74   : > { %616 = vmatpush.bf16.msra.mxu1 %v1790_v15  ;;  %705 = vmatpush.bf16.msra.mxu2 %v1799_v48  ;;  %v1817_v15 = vld [vmem:[#allocation10 + $0xa8] sm:$0xff] }
  0x75   : > { %795 = vmatpush.bf16.msra.mxu3 %v1808_v60 }
  0x76   : > { %515 = vmatpush.bf16.msra.mxu0 %v1781_v8  ;;  %v1806_v8 = vld [vmem:[#allocation10 + $0x50] sm:$0xff] }
  0x78   : > { %617 = vmatpush.bf16.msra.mxu1 %v1789_v16  ;;  %706 = vmatpush.bf16.msra.mxu2 %v1798_v49 }
  0x79   : > { %796 = vmatpush.bf16.msra.mxu3 %v1807_v7 }
  0x7a   : > { %516 = vmatpush.bf16.msra.mxu0 %v1780_v10  ;;  %v1804_v10 = vld [vmem:[#allocation10 + $0x40] sm:$0xff] }
  0x7c   : > { %618 = vmatpush.bf16.msra.mxu1 %v1788_v17  ;;  %707 = vmatpush.bf16.msra.mxu2 %v1797_v50 }
  0x7d   : > { %517 = vmatmul.bf16.vlgmr.msra.gmra.mxu0 %v1778_v12  ;;  %797 = vmatpush.bf16.msra.mxu3 %v1806_v8 }
  0x7e   : > { %891 = vmatpush.bf16.msrb.mxu0 %v1819_v11 }
  0x80   : > { %708 = vmatpush.bf16.msra.mxu2 %v1796_v51  ;;  %982 = vmatpush.bf16.msrb.mxu1 %v1827_v38  ;;  %v1840_v38 = vld [vmem:[#allocation10 + $0x160] sm:$0xff] }
  0x81   : > { %798 = vmatpush.bf16.msra.mxu3 %v1805_v9 }
  0x85   : > { %799 = vmatpush.bf16.msra.mxu3 %v1804_v10  ;;  %v1832_v10 = vld [vmem:[#allocation10 + $0x120] sm:$0xff] }
  0x8d   : > { %522 = vmatmul.bf16.gmra.mxu0 %v1779_v13  ;;  %v1818_v13 = vld [vmem:[#allocation10 + $0xb0] sm:$0xff] }
  0x8e   : > { %892 = vmatpush.bf16.msrb.mxu0 %v1818_v13 }
  0x92   : > { %893 = vmatpush.bf16.msrb.mxu0 %v1817_v15 }
  0xfa   : > { %v518_v19 = vpop.f32.mrf.mxu0 }
  0xfb   : > { %v519_v23 = vadd.f32 %v518_v19, %v448_v20 }
  0xfd   : > { %v536_v28 = vmax.f32 %v519_v23, 0.0 }
  0xff   : > { %v540_v33 = vadd.f32 %v1855_v27, %v536_v28 }
 0x102   : > { %v520_v26 = vpop.f32.mrf.mxu0 }
 0x103   : > { %v521_v29 = vadd.f32 %v520_v26, %v448_v20 }
 0x105   : > { %v537_v31 = vmax.f32 %v521_v29, 0.0 }
 0x107   : > { %v541_v34 = vadd.f32 %v1856_v30, %v537_v31  ;;  %v1815_v31 = vld [vmem:[#allocation10 + $0x98] sm:$0xff] }
 0x109   : > { %v544_v35 = vpack.c.bf16 %v541_v34, %v540_v33  ;;  %v1813_v33 = vld [vmem:[#allocation10 + $0x88] sm:$0xff]  ;;  %v1812_v34 = vld [vmem:[#allocation10 + $0x80] sm:$0xff] }
 0x10a   : > { %v523_v36 = vpop.f32.mrf.mxu0 }
 0x10b   : > { %619 = vmatmul.bf16.vlgmr.msra.gmra.mxu1 %v544_v35  ;;  %v524_v37 = vadd.f32 %v523_v36, %v448_v20  ;;  %v743_v35 = vperm.slane %v2516_v18, 3 }
 0x10d   : > { %v538_v41 = vmax.f32 %v524_v37, 0.0 }
 0x10f   : > { %v542_v45 = vadd.f32 %v1859_v40, %v538_v41 }
 0x112   : > { %v525_v39 = vpop.f32.mrf.mxu0 }
 0x113   : > { %v526_v42 = vadd.f32 %v525_v39, %v448_v20  ;;  %v1816_v20 = vld [vmem:[#allocation10 + $0xa0] sm:$0xff]  ;;  %v1826_v39 = vld [vmem:[#allocation10 + $0xf0] sm:$0xff] }
 0x114   : > { %894 = vmatpush.bf16.msrb.mxu0 %v1816_v20  ;;  %983 = vmatpush.bf16.msrb.mxu1 %v1826_v39 }
 0x115   : > { %v539_v44 = vmax.f32 %v526_v42, 0.0 }
 0x117   : > { %v543_v46 = vadd.f32 %v1860_v43, %v539_v44  ;;  %v1825_v43 = vld [vmem:[#allocation10 + $0xe8] sm:$0xff] }
 0x118   : > { %895 = vmatpush.bf16.msrb.mxu0 %v1815_v31  ;;  %984 = vmatpush.bf16.msrb.mxu1 %v1825_v43  ;;  %v1839_v43 = vld [vmem:[#allocation10 + $0x158] sm:$0xff] }
 0x119   : > { %v545_v47 = vpack.c.bf16 %v543_v46, %v542_v45 }
 0x11b   : > { %624 = vmatmul.bf16.gmra.mxu1 %v545_v47  ;;  %v1824_v47 = vld [vmem:[#allocation10 + $0xe0] sm:$0xff] }
 0x11c   : > { %896 = vmatpush.bf16.msrb.mxu0 %v1814_v32  ;;  %985 = vmatpush.bf16.msrb.mxu1 %v1824_v47 }
 0x120   : > { %897 = vmatpush.bf16.msrb.mxu0 %v1813_v33  ;;  %986 = vmatpush.bf16.msrb.mxu1 %v1823_v52 }
 0x124   : > { %898 = vmatpush.bf16.msrb.mxu0 %v1812_v34  ;;  %v1841_v34 = vld [vmem:[#allocation10 + $0x168] sm:$0xff] }
 0x188   : > { %v620_v53 = vpop.f32.mrf.mxu1 }
 0x189   : > { %v2522_v57 = vadd.f32 %v620_v53, %v562_v55 }
 0x18b   : > { %v630_v61 = vmax.f32 %v2522_v57, 0.0 }
 0x190   : > { %v622_v58 = vpop.f32.mrf.mxu1 }
 0x191   : > { %v2524_v59 = vadd.f32 %v622_v58, %v562_v55 }
 0x193   : > { %v631_v62 = vmax.f32 %v2524_v59, 0.0 }
 0x195   : > { %v634_v63 = vpack.c.bf16 %v631_v62, %v630_v61 }
 0x197   : > { %709 = vmatmul.bf16.vlgmr.msra.gmra.mxu2 %v634_v63  ;;  %v1822_v63 = vld [vmem:[#allocation10 + $0xd0] sm:$0xff] }
 0x198   : > { %v625_v0 = vpop.f32.mrf.mxu1  ;;  %987 = vmatpush.bf16.msrb.mxu1 %v1822_v63 }
 0x199   : > { %v2532_v1 = vadd.f32 %v625_v0, %v562_v55  ;;  %v1821_v0 = vld [vmem:[#allocation10 + $0xc8] sm:$0xff] }
 0x19b   : > { %v632_v4 = vmax.f32 %v2532_v1, 0.0  ;;  %v1820_v1 = vld [vmem:[#allocation10 + $0xc0] sm:$0xff] }
 0x19c   : > { %988 = vmatpush.bf16.msrb.mxu1 %v1821_v0 }
 0x1a0   : > { %v627_v2 = vpop.f32.mrf.mxu1  ;;  %989 = vmatpush.bf16.msrb.mxu1 %v1820_v1 }
 0x1a1   : > { %v2534_v3 = vadd.f32 %v627_v2, %v562_v55  ;;  %v1835_v2 = vld [vmem:[#allocation10 + $0x138] sm:$0xff] }
 0x1a2   : > { %1081 = vmatpush.bf16.msrb.mxu2 %v1835_v2 }
 0x1a3   : > { %v633_v5 = vmax.f32 %v2534_v3, 0.0 }
 0x1a5   : > { %v635_v6 = vpack.c.bf16 %v633_v5, %v632_v4 }
 0x1a7   : > { %714 = vmatmul.bf16.gmra.mxu2 %v635_v6  ;;  %v1833_v6 = vld [vmem:[#allocation10 + $0x128] sm:$0xff] }
 0x21a   : > { %v710_v12 = vpop.f32.mrf.mxu2 }
 0x21b   : > { %v711_v16 = vadd.f32 %v710_v12, %v652_v14 }
 0x21d   : > { %v720_v21 = vmax.f32 %v711_v16, 0.0 }
 0x222   : > { %v712_v17 = vpop.f32.mrf.mxu2 }
 0x223   : > { %v713_v19 = vadd.f32 %v712_v17, %v652_v14 }
 0x225   : > { %v721_v22 = vmax.f32 %v713_v19, 0.0 }
 0x227   : > { %v724_v23 = vpack.c.bf16 %v721_v22, %v720_v21  ;;  %v1831_v22 = vld [vmem:[#allocation10 + $0x118] sm:$0xff] }
 0x229   : > { %800 = vmatmul.bf16.vlgmr.msra.gmra.mxu3 %v724_v23  ;;  %v1830_v23 = vld [vmem:[#allocation10 + $0x110] sm:$0xff] }
 0x22a   : > { %v715_v24 = vpop.f32.mrf.mxu2 }
 0x22b   : > { %v716_v25 = vadd.f32 %v715_v24, %v652_v14  ;;  %v1829_v24 = vld [vmem:[#allocation10 + $0x108] sm:$0xff] }
 0x22d   : > { %v722_v28 = vmax.f32 %v716_v25, 0.0  ;;  %v1828_v25 = vld [vmem:[#allocation10 + $0x100] sm:$0xff] }
 0x232   : > { %v717_v26 = vpop.f32.mrf.mxu2 }
 0x233   : > { %v718_v27 = vadd.f32 %v717_v26, %v652_v14  ;;  %v933_v26 = vperm.slane %v2516_v18, 5 }
 0x235   : > { %v723_v29 = vmax.f32 %v718_v27, 0.0 }
 0x237   : > { %v725_v30 = vpack.c.bf16 %v723_v29, %v722_v28  ;;  %v1843_v29 = vld [vmem:[#allocation10 + $0x178] sm:$0xff] }
 0x238   : > { %1172 = vmatpush.bf16.msrb.mxu3 %v1843_v29 }
 0x239   : > { %805 = vmatmul.bf16.gmra.mxu3 %v725_v30  ;;  %v1842_v30 = vld [vmem:[#allocation10 + $0x170] sm:$0xff] }
 0x23c   : > { %1173 = vmatpush.bf16.msrb.mxu3 %v1842_v30 }
 0x240   : > { %1174 = vmatpush.bf16.msrb.mxu3 %v1841_v34 }
 0x244   : > { %1175 = vmatpush.bf16.msrb.mxu3 %v1840_v38 }
 0x248   : > { %1176 = vmatpush.bf16.msrb.mxu3 %v1839_v43 }
 0x2ac   : > { %v801_v36 = vpop.f32.mrf.mxu3 }
 0x2ad   : > { %v802_v37 = vadd.f32 %v801_v36, %v743_v35 }
 0x2af   : > { %v811_v40 = vmax.f32 %v802_v37, 0.0 }
 0x2b1   : > { %v2546_v44 = vadd.f32 %v811_v40, %v630_v61 }
 0x2b3   : > { %v819_v48 = vmax.f32 %v2546_v44, 0.0 }
 0x2b4   : > { %v803_v41 = vpop.f32.mrf.mxu3 }
 0x2b5   : > { %v804_v42 = vadd.f32 %v803_v41, %v743_v35 }
 0x2b7   : > { %v812_v45 = vmax.f32 %v804_v42, 0.0 }
 0x2b9   : > { %v2550_v46 = vadd.f32 %v812_v45, %v631_v62 }
 0x2bb   : > { %v820_v49 = vmax.f32 %v2550_v46, 0.0 }
 0x2bc   : > { %v806_v50 = vpop.f32.mrf.mxu3 }
 0x2bd   : > { %v823_v51 = vpack.c.bf16 %v820_v49, %v819_v48  ;;  %v807_v53 = vadd.f32 %v806_v50, %v743_v35 }
 0x2bf   : > { %899 = vmatmul.bf16.vlgmr.msrb.gmra.mxu0 %v823_v51  ;;  %v813_v54 = vmax.f32 %v807_v53, 0.0 }
 0x2c1   : > { %v2560_v57 = vadd.f32 %v813_v54, %v632_v4  ;;  %v1834_v4 = vld [vmem:[#allocation10 + $0x130] sm:$0xff] }
 0x2c2   : > { %1082 = vmatpush.bf16.msrb.mxu2 %v1834_v4  ;;  %v1838_v54 = vld [vmem:[#allocation10 + $0x150] sm:$0xff] }
 0x2c3   : > { %v821_v60 = vmax.f32 %v2560_v57, 0.0  ;;  %1177 = vmatpush.bf16.msrb.mxu3 %v1838_v54  ;;  %v1851_v57 = vld [vmem:[#allocation11 + $0x38] sm:$0xff] }
 0x2c4   : > { %v808_v55 = vpop.f32.mrf.mxu3  ;;  %1270 = vmatpush.bf16.msra.mxu0 %v1851_v57  ;;  %1862 = vmatpush.bf16.msra.mxu1 %v1851_v57 }
 0x2c5   : > { %v809_v56 = vadd.f32 %v808_v55, %v743_v35  ;;  %v1837_v55 = vld [vmem:[#allocation10 + $0x148] sm:$0xff] }
 0x2c6   : > { %1083 = vmatpush.bf16.msrb.mxu2 %v1833_v6 }
 0x2c7   : > { %v814_v58 = vmax.f32 %v809_v56, 0.0  ;;  %1178 = vmatpush.bf16.msrb.mxu3 %v1837_v55  ;;  %v1836_v56 = vld [vmem:[#allocation10 + $0x140] sm:$0xff] }
 0x2c9   : > { %v2564_v59 = vadd.f32 %v814_v58, %v633_v5  ;;  %v842_v5 = vperm.slane %v2516_v18, 4 }
 0x2ca   : > { %1084 = vmatpush.bf16.msrb.mxu2 %v1832_v10 }
 0x2cb   : > { %v822_v61 = vmax.f32 %v2564_v59, 0.0  ;;  %1179 = vmatpush.bf16.msrb.mxu3 %v1836_v56  ;;  %v1850_v59 = vld [vmem:[#allocation11 + $0x30] sm:$0xff] }
 0x2cc   : > { %1271 = vmatpush.bf16.msra.mxu0 %v1850_v59  ;;  %1863 = vmatpush.bf16.msra.mxu1 %v1850_v59 }
 0x2cd   : > { %v824_v62 = vpack.c.bf16 %v822_v61, %v821_v60 }
 0x2ce   : > { %1085 = vmatpush.bf16.msrb.mxu2 %v1831_v22 }
 0x2cf   : > { %904 = vmatmul.bf16.gmra.mxu0 %v824_v62 }
 0x2d2   : > { %1086 = vmatpush.bf16.msrb.mxu2 %v1830_v23 }
 0x2d6   : > { %1087 = vmatpush.bf16.msrb.mxu2 %v1829_v24 }
 0x2da   : > { %1088 = vmatpush.bf16.msrb.mxu2 %v1828_v25 }
 0x33c   : > { %v900_v3 = vpop.f32.mrf.mxu0 }
 0x33d   : > { %v901_v7 = vadd.f32 %v900_v3, %v842_v5 }
 0x33f   : > { %v910_v11 = vmax.f32 %v901_v7, 0.0 }
 0x344   : > { %v902_v8 = vpop.f32.mrf.mxu0 }
 0x345   : > { %v903_v9 = vadd.f32 %v902_v8, %v842_v5 }
 0x347   : > { %v911_v12 = vmax.f32 %v903_v9, 0.0 }
 0x349   : > { %v914_v13 = vpack.c.bf16 %v911_v12, %v910_v11  ;;  %v1848_v11 = vld [vmem:[#allocation11 + $0x20] sm:$0xff]  ;;  %v1847_v12 = vld [vmem:[#allocation11 + $0x18] sm:$0xff] }
 0x34b   : > { %990 = vmatmul.bf16.vlgmr.msrb.gmra.mxu1 %v914_v13  ;;  %v1846_v13 = vld [vmem:[#allocation11 + $0x10] sm:$0xff] }
 0x34c   : > { %v905_v14 = vpop.f32.mrf.mxu0 }
 0x34d   : > { %v906_v15 = vadd.f32 %v905_v14, %v842_v5  ;;  %v1845_v14 = vld [vmem:[#allocation11 + $0x8] sm:$0xff] }
 0x34f   : > { %v912_v19 = vmax.f32 %v906_v15, 0.0  ;;  %v1844_v15 = vld [vmem:[#allocation11] sm:$0xff] }
 0x354   : > { %v907_v16 = vpop.f32.mrf.mxu0 }
 0x355   : > { %v908_v17 = vadd.f32 %v907_v16, %v842_v5  ;;  %v1123_v16 = vperm.slane %v2516_v18, 7 }
 0x357   : > { %v913_v20 = vmax.f32 %v908_v17, 0.0 }
 0x359   : > { %v915_v21 = vpack.c.bf16 %v913_v20, %v912_v19 }
 0x35b   : > { %995 = vmatmul.bf16.gmra.mxu1 %v915_v21 }
 0x3c8   : > { %v991_v27 = vpop.f32.mrf.mxu1 }
 0x3c9   : > { %v992_v28 = vadd.f32 %v991_v27, %v933_v26 }
 0x3cb   : > { %v1001_v31 = vmax.f32 %v992_v28, 0.0 }
 0x3cd   : > { %v2576_v35 = vadd.f32 %v1001_v31, %v819_v48 }
 0x3cf   : > { %v1009_v39 = vmax.f32 %v2576_v35, 0.0 }
 0x3d0   : > { %v993_v32 = vpop.f32.mrf.mxu1 }
 0x3d1   : > { %v994_v33 = vadd.f32 %v993_v32, %v933_v26 }
 0x3d3   : > { %v1002_v36 = vmax.f32 %v994_v33, 0.0 }
 0x3d5   : > { %v2580_v37 = vadd.f32 %v1002_v36, %v820_v49 }
 0x3d7   : > { %v1010_v40 = vmax.f32 %v2580_v37, 0.0 }
 0x3d8   : > { %v996_v41 = vpop.f32.mrf.mxu1 }
 0x3d9   : > { %v1013_v42 = vpack.c.bf16 %v1010_v40, %v1009_v39  ;;  %v997_v44 = vadd.f32 %v996_v41, %v933_v26 }
 0x3db   : > { %1089 = vmatmul.bf16.vlgmr.msrb.gmra.mxu2 %v1013_v42  ;;  %v1003_v45 = vmax.f32 %v997_v44, 0.0 }
 0x3dd   : > { %v2590_v48 = vadd.f32 %v1003_v45, %v821_v60  ;;  %v1032_v60 = vperm.slane %v2516_v18, 6 }
 0x3df   : > { %v1011_v51 = vmax.f32 %v2590_v48, 0.0 }
 0x3e0   : > { %v998_v46 = vpop.f32.mrf.mxu1 }
 0x3e1   : > { %v999_v47 = vadd.f32 %v998_v46, %v933_v26 }
 0x3e3   : > { %v1004_v49 = vmax.f32 %v999_v47, 0.0 }
 0x3e5   : > { %v2594_v50 = vadd.f32 %v1004_v49, %v822_v61  ;;  %v1849_v61 = vld [vmem:[#allocation11 + $0x28] sm:$0xff] }
 0x3e6   : > { %1272 = vmatpush.bf16.msra.mxu0 %v1849_v61  ;;  %1864 = vmatpush.bf16.msra.mxu1 %v1849_v61 }
 0x3e7   : > { %v1012_v52 = vmax.f32 %v2594_v50, 0.0 }
 0x3e9   : > { %v1014_v53 = vpack.c.bf16 %v1012_v52, %v1011_v51 }
 0x3ea   : > { %1273 = vmatpush.bf16.msra.mxu0 %v1848_v11  ;;  %1865 = vmatpush.bf16.msra.mxu1 %v1848_v11 }
 0x3eb   : > { %1094 = vmatmul.bf16.gmra.mxu2 %v1014_v53 }
 0x3ee   : > { %1274 = vmatpush.bf16.msra.mxu0 %v1847_v12  ;;  %1866 = vmatpush.bf16.msra.mxu1 %v1847_v12 }
 0x3f2   : > { %1275 = vmatpush.bf16.msra.mxu0 %v1846_v13  ;;  %1867 = vmatpush.bf16.msra.mxu1 %v1846_v13 }
 0x3f6   : > { %1276 = vmatpush.bf16.msra.mxu0 %v1845_v14  ;;  %1868 = vmatpush.bf16.msra.mxu1 %v1845_v14 }
 0x3fa   : > { %1277 = vmatpush.bf16.msra.mxu0 %v1844_v15  ;;  %1869 = vmatpush.bf16.msra.mxu1 %v1844_v15 }
 0x45e   : > { %v1090_v58 = vpop.f32.mrf.mxu2 }
 0x45f   : > { %v1091_v62 = vadd.f32 %v1090_v58, %v1032_v60 }
 0x461   : > { %v1100_v1 = vmax.f32 %v1091_v62, 0.0 }
 0x466   : > { %v1092_v63 = vpop.f32.mrf.mxu2 }
 0x467   : > { %v1093_v0 = vadd.f32 %v1092_v63, %v1032_v60 }
 0x469   : > { %v1101_v2 = vmax.f32 %v1093_v0, 0.0 }
 0x46b   : > { %v1104_v3 = vpack.c.bf16 %v1101_v2, %v1100_v1 }
 0x46d   : > { %1180 = vmatmul.bf16.vlgmr.msrb.gmra.mxu3 %v1104_v3 }
 0x46e   : > { %v1095_v4 = vpop.f32.mrf.mxu2 }
 0x46f   : > { %v1096_v5 = vadd.f32 %v1095_v4, %v1032_v60 }
 0x471   : > { %v1102_v8 = vmax.f32 %v1096_v5, 0.0 }
 0x476   : > { %v1097_v6 = vpop.f32.mrf.mxu2 }
 0x477   : > { %v1098_v7 = vadd.f32 %v1097_v6, %v1032_v60 }
 0x479   : > { %v1103_v9 = vmax.f32 %v1098_v7, 0.0 }
 0x47b   : > { %v1105_v10 = vpack.c.bf16 %v1103_v9, %v1102_v8 }
 0x47d   : > { %1185 = vmatmul.bf16.gmra.mxu3 %v1105_v10 }
 0x4f0   : > { %v1181_v17 = vpop.f32.mrf.mxu3 }
 0x4f1   : > { %v1182_v19 = vadd.f32 %v1181_v17, %v1123_v16 }
 0x4f3   : > { %v1191_v20 = vmax.f32 %v1182_v19, 0.0 }
 0x4f5   : > { %v1195_v23 = vadd.f32 %v1191_v20, %v1009_v39  ;;  %v427_v39 = vld [vmem:[#allocation13 + $0x8] sm:$0xff] }
 0x4f7   : > { %v1199_v26 = vmax.f32 %v1195_v23, 0.0 }
 0x4f8   : > { %v1183_v21 = vpop.f32.mrf.mxu3 }
 0x4f9   : > { %v1184_v22 = vadd.f32 %v1183_v21, %v1123_v16 }
 0x4fb   : > { %v1192_v24 = vmax.f32 %v1184_v22, 0.0 }
 0x4fd   : > { %v1196_v25 = vadd.f32 %v1192_v24, %v1010_v40  ;;  %v1221_v40 = vperm.slane %v427_v39, 0 }
 0x4ff   : > { %v1200_v27 = vmax.f32 %v1196_v25, 0.0 }
 0x500   : > { %v1186_v28 = vpop.f32.mrf.mxu3 }
 0x501   : > { %v1203_v29 = vpack.c.bf16 %v1200_v27, %v1199_v26  ;;  %v1187_v30 = vadd.f32 %v1186_v28, %v1123_v16 }
 0x503   : > { %1278 = vmatmul.bf16.vlgmr.msra.gmra.mxu0 %v1203_v29  ;;  %v1193_v18 = vmax.f32 %v1187_v30, 0.0 }
 0x505   : > { %v1197_v33 = vadd.f32 %v1193_v18, %v1011_v51 }
 0x507   : > { %v1201_v36 = vmax.f32 %v1197_v33, 0.0 }
 0x508   : > { %v1188_v31 = vpop.f32.mrf.mxu3 }
 0x509   : > { %v1189_v32 = vadd.f32 %v1188_v31, %v1123_v16 }
 0x50b   : > { %v1194_v34 = vmax.f32 %v1189_v32, 0.0 }
 0x50d   : > { %v1198_v35 = vadd.f32 %v1194_v34, %v1012_v52 }
 0x50f   : > { %v1202_v37 = vmax.f32 %v1198_v35, 0.0 }
 0x511   : > { %v1204_v38 = vpack.c.bf16 %v1202_v37, %v1201_v36 }
 0x513   : > { %1283 = vmatmul.bf16.vlgmr.msra.gmra.mxu1 %v1204_v38 }
 0x580   : > { %v1279_v41 = vpop.f32.mrf.mxu0 }
 0x581   : > { %v1280_v42 = vadd.f32 %v1279_v41, %v1221_v40 }
 0x583   : > { %1289 = vst [vmem:[%s422_s18] sm:$0xff] %v1280_v42 }
 0x588   : > { %v1281_v43 = vpop.f32.mrf.mxu0 }
 0x589   : > { %v1282_v44 = vadd.f32 %v1281_v43, %v1221_v40 }
 0x58b   : > { %1290 = vst [vmem:[%s422_s18 + $0x8] sm:$0xff] %v1282_v44 }
 0x590   : > { %v1284_v45 = vpop.f32.mrf.mxu1 }
 0x591   : > { %v1285_v46 = vadd.f32 %v1284_v45, %v1221_v40 }
 0x593   : > { %1291 = vst [vmem:[%s422_s18 + $0x10] sm:$0xff] %v1285_v46 }
 0x598   : > { %v1286_v47 = vpop.f32.mrf.mxu1 }
 0x599   : > { %v1287_v48 = vadd.f32 %v1286_v47, %v1221_v40 }
 0x59b   : > { %1292 = vst [vmem:[%s422_s18 + $0x18] sm:$0xff] %v1287_v48 }
 0x59c   : > { %2215 = shalt.err (!%p2212_p5)
}
 0x59d   : > { %s2281_s21 = smov 128   ;;  %s2282_s5 = smov 8  }
 0x59e   : > { %1894 = dma.vmem_to_hbm [thread:$0]  (%p2425_p0), %s1307_s2, 512, %s1309_s20, %s1294_s12, %s2281_s21, %s2281_s21, %s2282_s5  }
 0x59f PF: > { %s1323_s9 = sand.u32 1, %s2258_s24   ;;  %p2677_p10 = scmp.ge.s32.totalorder %s2270_s27, 2 }
 0x5a0   : > { %s1324_s23 = scalar_lea.sflag [#allocation4], %s1323_s9 }
 0x5a1   : > { %p1920_p11 = pnand %p2677_p10, %p2431_p6 }
 0x5a3   : > { %p1921_p12 = pneg %p1920_p11 }
 0x5a5   : > { %2253 = dma.done.wait (%p1921_p12), %s1324_s23, 512  }
 0x5a6   : > { %2255 = vsyncadd (%p1921_p12), %s1324_s23, 4294966784  ;;  %p25_p2 = scmp.ge.s32.totalorder %s2401_s28, 4   ;;  %s2678_s24 = smov %s2262_s25 }
 0x5a7   : > { %s2679_s25 = smov %s2266_s26  ;;  %s2680_s26 = smov %s2413_s29 }
 0x5a8   : > { %s2681_s27 = smov %s2401_s28  ;;  %27 = sbr.rel (!%p25_p2) target bundleno = 15 (0xf), region = 131 }
 0x5ad   :  { %1330 = vsyncpa [#allocation3], 1 }
 0x5ae   :  { %1332 = vsyncpa [#allocation3 + $0x1], 1 }
 0x5af   :  { %1333 = vsyncpa [#allocation6], 1 }
 0x5b0   :  { %1335 = vsyncpa [#allocation6 + $0x1], 1 }
 0x5b1   :  { %1336 = vsyncpa [#allocation9], 1 }
 0x5b2   :  { %1337 = vsyncpa [#allocation12], 1 }
 0x5b3   :  { %1338 = vsyncpa [#allocation4], 1 }
 0x5b4   :  { %1340 = vsyncpa [#allocation4 + $0x1], 1 }

</bundles_post_ra>
